<compile_context>
chip_gen: v7x
topology: tpu7x:2x2x1
jax: 0.10.0
libtpu: 0.0.40
codegen_flags: <defaults>
</compile_context>

<pallas_src>
import jax
import jax.numpy as jnp
from jax.experimental import pallas as pl
from jax.experimental.pallas import tpu as pltpu

EPS = 1e-6


def layernorm_kernel(x_ref, a2_ref, b2_ref, o_ref):
    # x_ref: (tm, H) tile of rows; a2/b2: (1, H) params resident in VMEM.
    # Reductions kept in f32 (v5e VPU has no bf16; accuracy of mean/var).
    x = x_ref[...].astype(jnp.float32)
    h = x.shape[-1]

    # --- LayerNorm, torch.std semantics: unbiased (n-1) var, eps added to std ---
    mean = jnp.mean(x, axis=-1, keepdims=True)
    centered = x - mean
    var_unbiased = jnp.sum(centered * centered, axis=-1, keepdims=True) / (h - 1)
    std = jnp.sqrt(var_unbiased)

    # Exact divide: the kernel is HBM-bound, so an approx EUP reciprocal buys
    # nothing in wall-clock and would only cost accuracy.
    normed = centered / (std + EPS)
    out = a2_ref[...].astype(jnp.float32) * normed + b2_ref[...].astype(jnp.float32)
    o_ref[...] = out.astype(o_ref.dtype)


def _round_up(n, m):
    return ((n + m - 1) // m) * m


def _pick_row_tile(rows, row_bytes, *, target_bytes=2 << 20, min_grid=4):
    """Row tile sized by bytes (~target_bytes per (tm, H) input block),
    multiple of 8, capped so the parallel grid axis has >= min_grid steps
    whenever rows permit (lets v7x shard across its 2 TensorCores)."""
    tm = max(8, (target_bytes // row_bytes) // 8 * 8)
    if rows >= 8 * min_grid:
        cap = _round_up(pl.cdiv(rows, min_grid), 8)
        tm = min(tm, cap)
    # Never bigger than the (rounded-up) row count.
    tm = min(tm, _round_up(rows, 8))
    return max(8, tm)


def layer_norm(x, a2, b2):
    """x: (..., H). a2/b2: (H,). Returns same shape/dtype as x."""
    orig_shape = x.shape
    H = orig_shape[-1]
    # torch.std with n-1 denominator is NaN for a single element; require H > 1.
    assert H > 1, "unbiased std (n-1) needs at least 2 elements in the last dim"

    rows = 1
    for d in orig_shape[:-1]:
        rows *= d

    itemsize = jnp.dtype(x.dtype).itemsize
    tm = _pick_row_tile(rows, H * itemsize)
    grid = (pl.cdiv(rows, tm),)  # ragged last block handled by Pallas

    x2d = x.reshape(rows, H)
    a2_2d = a2.reshape(1, H)
    b2_2d = b2.reshape(1, H)

    # VMEM budget: 2x double-buffered input tile + 2x output tile (in x dtype)
    # plus ~3 full-size f32 temporaries (upcast x, centered, affine result),
    # params and headroom.  Capped at 48 MiB -> safe on v7x (64 MiB physical),
    # still overrides the small default scoped limits on v5e/v6e.
    io_tile = tm * H * itemsize
    f32_tile = tm * H * 4
    vmem_bytes = 4 * io_tile + 3 * f32_tile + (2 << 20)
    vmem_bytes = min(max(vmem_bytes, 8 << 20), 48 << 20)

    # Advisory cost hint: this op is bandwidth-dominated (read + write x once).
    cost = pl.CostEstimate(
        flops=8 * rows * H,
        transcendentals=2 * rows,                      # sqrt + divide per row
        bytes_accessed=2 * rows * H * itemsize + 2 * H * itemsize,
    )

    out2d = pl.pallas_call(
        layernorm_kernel,
        out_shape=jax.ShapeDtypeStruct((rows, H), x.dtype),
        grid_spec=pltpu.PrefetchScalarGridSpec(
            num_scalar_prefetch=0,
            grid=grid,
            in_specs=[
                pl.BlockSpec((tm, H), lambda i: (i, 0)),  # x row tile
                pl.BlockSpec((1, H), lambda i: (0, 0)),   # a_2 (scale), resident
                pl.BlockSpec((1, H), lambda i: (0, 0)),   # b_2 (shift), resident
            ],
            out_specs=pl.BlockSpec((tm, H), lambda i: (i, 0)),
        ),
        compiler_params=pltpu.CompilerParams(
            dimension_semantics=("parallel",),
            vmem_limit_bytes=vmem_bytes,
        ),
        cost_estimate=cost,
    )(x2d, a2_2d, b2_2d)

    return out2d.reshape(orig_shape)


def _reference(x, a2, b2):
    """Pure-JAX reference of the same math (torch.std: unbiased, eps on std)."""
    xf = x.astype(jnp.float32)
    H = x.shape[-1]
    mean = jnp.mean(xf, axis=-1, keepdims=True)
    var_unb = jnp.sum((xf - mean) ** 2, axis=-1, keepdims=True) / (H - 1)
    std = jnp.sqrt(var_unb)
    return a2 * (xf - mean) / (std + EPS) + b2


if __name__ == "__main__":
    key = jax.random.PRNGKey(0)
    kx, ka, kb, kx2 = jax.random.split(key, 4)

    # Main check: rows = B*S = 512 -> tile capped for >= 4 grid steps.
    B, S, H = 2, 256, 128
    x = jax.random.normal(kx, (B, S, H), dtype=jnp.float32)
    # PyTorch init is ones/zeros; perturb deterministically so the affine
    # params are actually exercised.
    a2 = 1.0 + 0.1 * jax.random.normal(ka, (H,), dtype=jnp.float32)
    b2 = 0.05 * jax.random.normal(kb, (H,), dtype=jnp.float32)

    out = jax.block_until_ready(layer_norm(x, a2, b2))
    ref = _reference(x, a2, b2)
    assert jnp.allclose(out, ref, atol=1e-4, rtol=1e-4), "mismatch vs reference"

    # Secondary check: row count NOT a multiple of 8 (exercises the ragged
    # last block that the old divisor-based tiler rejected).
    x2 = jax.random.normal(kx2, (3, 7, H), dtype=jnp.float32)
    out2 = jax.block_until_ready(layer_norm(x2, a2, b2))
    ref2 = _reference(x2, a2, b2)
    assert jnp.allclose(out2, ref2, atol=1e-4, rtol=1e-4), "ragged-row mismatch"

    print("KERNEL_OK")
</pallas_src>

<mosaic_0001>
module attributes {stable_mosaic.version = 11 : i64} {
  func.func @layernorm_kernel(%arg0: i32, %arg1: memref<128x128xf32, #tpu.memory_space<vmem>>, %arg2: memref<1x128xf32, #tpu.memory_space<vmem>>, %arg3: memref<1x128xf32, #tpu.memory_space<vmem>>, %arg4: memref<128x128xf32, #tpu.memory_space<vmem>>) attributes {dimension_semantics = [#tpu.dimension_semantics<parallel>], iteration_bounds = array<i64: 4>, scalar_prefetch = 0 : i64, scratch_operands = 0 : i64, tpu.core_type = #tpu.core_type<tc>, window_params = [{transform_indices = @transform_0, window_bounds = array<i64: 128, 128>}, {pipeline_mode = #tpu.pipeline_mode<synchronous>, transform_indices = @transform_1, window_bounds = array<i64: 1, 128>}, {pipeline_mode = #tpu.pipeline_mode<synchronous>, transform_indices = @transform_2, window_bounds = array<i64: 1, 128>}, {transform_indices = @transform_3, window_bounds = array<i64: 128, 128>}]} {
    %c0 = arith.constant 0 : index
    %c0_0 = arith.constant 0 : index
    %0 = vector.load %arg1[%c0, %c0_0] : memref<128x128xf32, #tpu.memory_space<vmem>>, vector<128x128xf32>
    %cst = arith.constant dense<0.000000e+00> : vector<128xf32>
    %1 = vector.multi_reduction <add>, %0, %cst [1] : vector<128x128xf32> to vector<128xf32>
    %2 = vector.shape_cast %1 : vector<128xf32> to vector<128x1xf32>
    %cst_1 = arith.constant 1.280000e+02 : f32
    %3 = vector.broadcast %cst_1 : f32 to vector<128x1xf32>
    %4 = arith.divf %2, %3 : vector<128x1xf32>
    %5 = vector.broadcast %4 : vector<128x1xf32> to vector<128x128xf32>
    %6 = arith.subf %0, %5 : vector<128x128xf32>
    %7 = arith.mulf %6, %6 : vector<128x128xf32>
    %cst_2 = arith.constant dense<0.000000e+00> : vector<128xf32>
    %8 = vector.multi_reduction <add>, %7, %cst_2 [1] : vector<128x128xf32> to vector<128xf32>
    %9 = vector.shape_cast %8 : vector<128xf32> to vector<128x1xf32>
    %cst_3 = arith.constant 1.270000e+02 : f32
    %10 = vector.broadcast %cst_3 : f32 to vector<128x1xf32>
    %11 = arith.divf %9, %10 : vector<128x1xf32>
    %12 = math.sqrt %11 : vector<128x1xf32>
    %cst_4 = arith.constant 9.99999997E-7 : f32
    %13 = vector.broadcast %cst_4 : f32 to vector<128x1xf32>
    %14 = arith.addf %12, %13 : vector<128x1xf32>
    %15 = vector.broadcast %14 : vector<128x1xf32> to vector<128x128xf32>
    %16 = arith.divf %6, %15 : vector<128x128xf32>
    %c0_5 = arith.constant 0 : index
    %c0_6 = arith.constant 0 : index
    %17 = vector.load %arg2[%c0_5, %c0_6] : memref<1x128xf32, #tpu.memory_space<vmem>>, vector<1x128xf32>
    %18 = vector.broadcast %17 : vector<1x128xf32> to vector<128x128xf32>
    %19 = arith.mulf %18, %16 : vector<128x128xf32>
    %c0_7 = arith.constant 0 : index
    %c0_8 = arith.constant 0 : index
    %20 = vector.load %arg3[%c0_7, %c0_8] : memref<1x128xf32, #tpu.memory_space<vmem>>, vector<1x128xf32>
    %21 = vector.broadcast %20 : vector<1x128xf32> to vector<128x128xf32>
    %22 = arith.addf %19, %21 : vector<128x128xf32>
    %c0_9 = arith.constant 0 : index
    %c0_10 = arith.constant 0 : index
    %23 = vector.load %arg4[%c0_9, %c0_10] : memref<128x128xf32, #tpu.memory_space<vmem>>, vector<128x128xf32>
    tpu.vector_store %arg4[%c0_9, %c0_10], %22 {strides = array<i32>} : memref<128x128xf32, #tpu.memory_space<vmem>>, vector<128x128xf32>,
    return
  }
  func.func @transform_0(%arg0: i32) -> (i32, i32) {
    %c0_i32 = arith.constant 0 : i32
    %c0_i32_0 = arith.constant 0 : i32
    return %arg0, %c0_i32 : i32, i32
  }
  func.func @transform_1(%arg0: i32) -> (i32, i32) {
    %c0_i32 = arith.constant 0 : i32
    %c0_i32_0 = arith.constant 0 : i32
    %c0_i32_1 = arith.constant 0 : i32
    return %c0_i32, %c0_i32_0 : i32, i32
  }
  func.func @transform_2(%arg0: i32) -> (i32, i32) {
    %c0_i32 = arith.constant 0 : i32
    %c0_i32_0 = arith.constant 0 : i32
    %c0_i32_1 = arith.constant 0 : i32
    return %c0_i32, %c0_i32_0 : i32, i32
  }
  func.func @transform_3(%arg0: i32) -> (i32, i32) {
    %c0_i32 = arith.constant 0 : i32
    %c0_i32_0 = arith.constant 0 : i32
    return %arg0, %c0_i32 : i32, i32
  }
}

</mosaic_0001>

<bundles_post_ra>
// kernel: tpu_custom_call.1
= control target key start
LH: loop header
LB: loop body
LE: loop exit
PB: predicated region body
PF: predicated region fallthrough
CT: control target
= control target key end

     0   :  { %8 = vsyncpa [#allocation3], 0  ;;  %s1381_s0 = inlined_call_operand.hbm [shape: f32[512,128], index: 0, kind: input, shape index: {}]   ;;  %s1382_s1 = inlined_call_operand.vmem [shape: f32[1,128], index: 1, kind: input, shape index: {}]   ;;  %s1383_s2 = inlined_call_operand.vmem [shape: f32[1,128], index: 2, kind: input, shape index: {}]   ;;  %s1384_s3 = inlined_call_operand.hbm [shape: f32[512,128], index: 3, kind: output, shape index: {}]  }
   0x1   :  { %10 = vsyncpa [#allocation3 + $0x1], 0 }
   0x2   :  { %11 = vsyncpa [#allocation4], 0 }
   0x3   :  { %13 = vsyncpa [#allocation4 + $0x1], 0  ;;  %s902_s12 = smov 0   ;;  %s904_s13 = smov 0  }
   0x4   :  { %s906_s14 = smov 0   ;;  %s908_s15 = smov 0  }
   0x5 LB: > { %s923_s16 = sadd.s32 4294967295, %s874_s15   ;;  %s646_s17 = sadd.s32 4294967294, %s874_s15   ;;  %s874_s15 = sphi %s908_s15, %s1396_s15   ;;  %s870_s14 = sphi %s906_s14, %s1395_s14   ;;  %s866_s13 = sphi %s904_s13, %s1394_s13   ;;  %s862_s12 = sphi %s902_s12, %s1393_s12  }
   0x6   : > { %s927_s18 = sadd.s32 1, %s874_s15   ;;  %s26_s19 = sadd.s32 1, %s870_s14 }
   0x7   : > { %s23_s20 = ssub.s32 %s874_s15, %s927_s18  ;;  %p33_p0 = scmp.ne.s32.totalorder %s870_s14, %s866_s13 }
   0x8   : > { %p24_p1 = scmp.eq.s32.totalorder %s23_s20, 0  ;;  %p34_p2 = scmp.eq.s32.totalorder %s874_s15, 0 }
   0x9   : > { %p39_p3 = scmp.ne.s32.totalorder %s866_s13, %s862_s12  ;;  %p40_p4 = scmp.eq.s32.totalorder %s923_s16, 0 }
   0xa   : > { %s939_s21 = scalar_select %p24_p1, %s870_s14, %s26_s19  }
   0xb   : > { %p941_p5 = por %p34_p2, %p33_p0  ;;  %p945_p6 = por %p40_p4, %p39_p3 }
   0xc   : > { %p105_p7 = scmp.eq.s32.totalorder %s923_s16, 3  ;;  %p111_p8 = scmp.eq.s32.totalorder %s646_s17, 3 }
   0xd   : > { %p676_p9 = scmp.lt.s32.totalorder %s874_s15, 4  ;;  %s137_s26 = sand.u32 1, %s870_s14  }
   0xe   : > { %p951_p10 = por %p105_p7, %p33_p0  ;;  %p955_p11 = por %p111_p8, %p39_p3 }
   0xf   : > { %s662_s27 = sshll.u32 %s874_s15, 11  ;;  %s649_s28 = sshll.u32 %s137_s26, 7 }
  0x10   : > { %s1388_s24 = scalar_select %p951_p10, 1, 0 }
  0x11   : > { %s1389_s25 = scalar_select %p955_p11, 1, 0 }
  0x12   : > { %s964_s4 = scalar_lea.hbm %s1381_s0, %s662_s27  ;;  %s141_s5 = scalar_lea.vmem [#allocation2], %s649_s28 }
  0x13   : > { %s148_s6 = sshll.u32 %s141_s5, 4  ;;  %p968_p12 = pnand %p676_p9, %p941_p5  ;;  %s972_s6 = int_to_ptr.vmem [resolvable:$true] %s148_s6 }
  0x14   : > { %s974_s8 = scalar_lea.sflag [#allocation3], %s137_s26  ;;  %s778_s9 = scalar_lea.hbm %s964_s4, 2048 }
  0x15   : > { %p779_p13 = scmp.ne.s32.totalorder %s964_s4, %s778_s9  ;;  %p780_p0 = pneg %p968_p12 }
  0x16   : > { %s783_s17 = scalar_lea.hbm %s1381_s0, 8192  ;;  %p784_p3 = scmp.lt.u32.totalorder %s964_s4, %s1381_s0 }
  0x17   : > { %p781_p1 = pnand %p780_p0, %p779_p13  ;;  %p785_p4 = scmp.lt.u32.totalorder %s783_s17, %s778_s9 }
  0x18   : > { %p787_p7 = scmp.lt.u32.totalorder %s778_s9, %s964_s4 }
  0x19   : > { %p782_p2 = pneg %p781_p1  ;;  %p786_p5 = por %p785_p4, %p784_p3 }
  0x1b   : > { %p788_p8 = por %p787_p7, %p786_p5 }
  0x1d   : > { %p789_p9 = pnand %p788_p8, %p782_p2 }
  0x1f   : > { %792 = shalt.err (!%p789_p9)
}
  0x20   : > { %s793_s22 = scalar_lea.vmem %s972_s6, 2048  ;;  %s876_s26 = smov [#allocation2]  }
  0x21   : > { %p794_p13 = scmp.ne.s32.totalorder %s972_s6, %s793_s22  ;;  %s798_s27 = sshll.u32 %s876_s26, 4  ;;  %s799_s27 = int_to_ptr.vmem [resolvable:$false] %s798_s27 }
  0x22   : > { %s800_s28 = scalar_lea.vmem %s799_s27, 4096  ;;  %p801_p10 = scmp.lt.s32.totalorder %s972_s6, %s799_s27 }
  0x23   : > { %p796_p1 = pnand %p794_p13, %p780_p0  ;;  %p802_p3 = scmp.lt.s32.totalorder %s800_s28, %s793_s22 }
  0x25   : > { %p797_p11 = pneg %p796_p1  ;;  %p803_p4 = por %p802_p3, %p801_p10 }
  0x27   : > { %p804_p5 = pnand %p803_p4, %p797_p11 }
  0x29   : > { %807 = shalt.err (!%p804_p5)
}
  0x2a   : > { %s877_s29 = smov 128   ;;  %s878_s30 = smov 8  }
  0x2b   : > { %671 = dma.hbm_to_vmem [thread:$0]  (!%p968_p12), %s964_s4, 2048, %s972_s6, %s974_s8, %s877_s29, %s877_s29, %s878_s30  }
  0x2c   : > { %p652_p0 = scmp.ge.s32.totalorder %s874_s15, 1  ;;  %p156_p2 = scmp.lt.s32.totalorder %s874_s15, 5 }
  0x2e   : > { %p157_p7 = pnand %p652_p0, %p156_p2 }
  0x2f   : > { %s1005_s5 = sand.u32 (!%p157_p7), 1, %s866_s13  }
  0x30   : > { %160 = sbr.rel (%p157_p7) target bundleno = 441 (0x1b9), region = 32  ;;  %s653_s9 = sshll.u32 (!%p157_p7), %s1005_s5, 7 }
  0x31   : > { %s163_s10 = scalar_lea.sflag (!%p157_p7), [#allocation3], %s1005_s5  ;;  %s1011_s11 = scalar_lea.vmem (!%p157_p7), [#allocation2], %s653_s9 }
  0x37   : > { %853 = dma.done.wait (%p945_p6), %s163_s10, 2048  }
  0x38   : > { %855 = vsyncadd (%p945_p6), %s163_s10, 4294965248  ;;  %v191_v0 = vld [vmem:[%s1011_s11] sm:$0xff]  ;;  %v193_v1 = vld [vmem:[%s1011_s11 + $0x10] sm:$0xff]  ;;  %s1218_s8 = scalar_lea.vmem [#allocation5], %s653_s9  ;;  %s663_s17 = sshll.u32 %s923_s16, 11 }
  0x39   : > { %207 = vadd.xlane.f32.xlu0 %v191_v0  ;;  %211 = vadd.xlane.f32.xlu1 %v193_v1  ;;  %v192_v2 = vld [vmem:[%s1011_s11 + $0x8] sm:$0xff]  ;;  %v194_v3 = vld [vmem:[%s1011_s11 + $0x18] sm:$0xff]  ;;  %v195_v4 = vld [vmem:[%s1011_s11 + $0x20] sm:$0xff]  ;;  %s573_s19 = sshll.u32 %s1218_s8, 4  ;;  %s1333_s26 = scalar_lea.hbm %s1384_s3, %s663_s17  ;;  %s1335_s19 = int_to_ptr.vmem [resolvable:$true] %s573_s19 }
  0x3a   : > { %v196_v5 = vld [vmem:[%s1011_s11 + $0x28] sm:$0xff]  ;;  %v197_v6 = vld [vmem:[%s1011_s11 + $0x30] sm:$0xff]  ;;  %v198_v7 = vld [vmem:[%s1011_s11 + $0x38] sm:$0xff]  ;;  %s560_s16 = scalar_lea.sflag [#allocation4], %s1005_s5  ;;  %s808_s27 = scalar_lea.vmem %s1335_s19, 2048 }
  0x3b   : > { %v199_v8 = vld [vmem:[%s1011_s11 + $0x40] sm:$0xff]  ;;  %v200_v9 = vld [vmem:[%s1011_s11 + $0x48] sm:$0xff]  ;;  %v201_v10 = vld [vmem:[%s1011_s11 + $0x50] sm:$0xff]  ;;  %p809_p6 = scmp.ne.s32.totalorder %s1335_s19, %s808_s27  ;;  %p1391_p10 = scmp.ne.s32.totalorder %s1388_s24, 0 }
  0x3c   : > { %v1029_v11 = vld [vmem:[%s1011_s11 + $0x58] sm:$0xff]  ;;  %v1033_v12 = vld [vmem:[%s1011_s11 + $0x60] sm:$0xff]  ;;  %v1036_v13 = vld [vmem:[%s1011_s11 + $0x68] sm:$0xff]  ;;  %s879_s28 = smov [#allocation5]  }
  0x3d   : > { %209 = vadd.xlane.f32.xlu0 %v192_v2  ;;  %213 = vadd.xlane.f32.xlu1 %v194_v3  ;;  %v1041_v14 = vld [vmem:[%s1011_s11 + $0x70] sm:$0xff]  ;;  %v1044_v15 = vld [vmem:[%s1011_s11 + $0x78] sm:$0xff]  ;;  %p810_p11 = pnand %p809_p6, %p1391_p10  ;;  %s812_s29 = sshll.u32 %s879_s28, 4  ;;  %s813_s29 = int_to_ptr.vmem [resolvable:$false] %s812_s29 }
  0x3e   : > { %s814_s30 = scalar_lea.vmem %s813_s29, 4096  ;;  %p815_p8 = scmp.lt.s32.totalorder %s1335_s19, %s813_s29 }
  0x3f   : > { %p811_p12 = pneg %p810_p11  ;;  %p816_p9 = scmp.lt.s32.totalorder %s814_s30, %s808_s27 }
  0x41   : > { %215 = vadd.xlane.f32.xlu0 %v195_v4  ;;  %217 = vadd.xlane.f32.xlu1 %v196_v5  ;;  %p817_p13 = por %p816_p9, %p815_p8 }
  0x43   : > { %p818_p1 = pnand %p817_p13, %p811_p12 }
  0x45   : > { %219 = vadd.xlane.f32.xlu0 %v197_v6  ;;  %221 = vadd.xlane.f32.xlu1 %v198_v7 }
  0x49   : > { %223 = vadd.xlane.f32.xlu0 %v199_v8  ;;  %225 = vadd.xlane.f32.xlu1 %v200_v9 }
  0x4d   : > { %227 = vadd.xlane.f32.xlu0 %v201_v10  ;;  %229 = vadd.xlane.f32.xlu1 %v1029_v11 }
  0x51   : > { %231 = vadd.xlane.f32.xlu0 %v1033_v12  ;;  %233 = vadd.xlane.f32.xlu1 %v1036_v13 }
  0x55   : > { %235 = vadd.xlane.f32.xlu0 %v1041_v14  ;;  %237 = vadd.xlane.f32.xlu1 %v1044_v15 }
  0xc6   : > { %v208_v16 = vpop.xlane.xlu0 %207  ;;  %v212_v17 = vpop.xlane.xlu1 %211 }
  0xc7   : > { %v240_v18 = vmul.f32 0.0078125, %v208_v16  ;;  %v242_v19 = vmul.f32 0.0078125, %v212_v17 }
  0xc9   : > { %v1048_v20 = vsub.f32 %v191_v0, %v240_v18  ;;  %v1050_v21 = vsub.f32 %v193_v1, %v242_v19 }
  0xca   : > { %v210_v22 = vpop.xlane.xlu0 %209  ;;  %v214_v23 = vpop.xlane.xlu1 %213 }
  0xcb   : > { %v241_v24 = vmul.f32 0.0078125, %v210_v22  ;;  %v272_v25 = vmul.f32 %v1048_v20, %v1048_v20  ;;  %v243_v26 = vmul.f32 0.0078125, %v214_v23  ;;  %v274_v29 = vmul.f32 %v1050_v21, %v1050_v21 }
  0xcd   : > { %v1054_v27 = vsub.f32 %v192_v2, %v241_v24  ;;  %288 = vadd.xlane.f32.xlu0 %v272_v25  ;;  %v1056_v28 = vsub.f32 %v194_v3, %v243_v26 }
  0xce   : > { %v216_v30 = vpop.xlane.xlu0 %215  ;;  %v218_v31 = vpop.xlane.xlu1 %217 }
  0xcf   : > { %v244_v32 = vmul.f32 0.0078125, %v216_v30  ;;  %v273_v33 = vmul.f32 %v1054_v27, %v1054_v27  ;;  %v245_v34 = vmul.f32 0.0078125, %v218_v31  ;;  %v275_v37 = vmul.f32 %v1056_v28, %v1056_v28 }
  0xd1   : > { %v1062_v35 = vsub.f32 %v195_v4, %v244_v32  ;;  %292 = vadd.xlane.f32.xlu0 %v274_v29  ;;  %290 = vadd.xlane.f32.xlu1 %v273_v33  ;;  %v1064_v36 = vsub.f32 %v196_v5, %v245_v34 }
  0xd2   : > { %v220_v38 = vpop.xlane.xlu0 %219  ;;  %v222_v39 = vpop.xlane.xlu1 %221 }
  0xd3   : > { %v246_v40 = vmul.f32 0.0078125, %v220_v38  ;;  %v276_v41 = vmul.f32 %v1062_v35, %v1062_v35  ;;  %v247_v42 = vmul.f32 0.0078125, %v222_v39  ;;  %v277_v45 = vmul.f32 %v1064_v36, %v1064_v36 }
  0xd5   : > { %v1070_v43 = vsub.f32 %v197_v6, %v246_v40  ;;  %294 = vadd.xlane.f32.xlu1 %v275_v37  ;;  %296 = vadd.xlane.f32.xlu0 %v276_v41  ;;  %v1072_v44 = vsub.f32 %v198_v7, %v247_v42 }
  0xd6   : > { %v224_v46 = vpop.xlane.xlu0 %223  ;;  %v226_v47 = vpop.xlane.xlu1 %225 }
  0xd7   : > { %v248_v48 = vmul.f32 0.0078125, %v224_v46  ;;  %v278_v49 = vmul.f32 %v1070_v43, %v1070_v43  ;;  %v249_v50 = vmul.f32 0.0078125, %v226_v47  ;;  %v279_v53 = vmul.f32 %v1072_v44, %v1072_v44 }
  0xd9   : > { %v1078_v51 = vsub.f32 %v199_v8, %v248_v48  ;;  %298 = vadd.xlane.f32.xlu1 %v277_v45  ;;  %300 = vadd.xlane.f32.xlu0 %v278_v49  ;;  %v1080_v52 = vsub.f32 %v200_v9, %v249_v50 }
  0xda   : > { %v228_v54 = vpop.xlane.xlu0 %227  ;;  %v230_v55 = vpop.xlane.xlu1 %229 }
  0xdb   : > { %v250_v56 = vmul.f32 0.0078125, %v228_v54  ;;  %v280_v57 = vmul.f32 %v1078_v51, %v1078_v51  ;;  %v251_v58 = vmul.f32 0.0078125, %v230_v55  ;;  %v281_v61 = vmul.f32 %v1080_v52, %v1080_v52 }
  0xdd   : > { %v1086_v59 = vsub.f32 %v201_v10, %v250_v56  ;;  %302 = vadd.xlane.f32.xlu1 %v279_v53  ;;  %304 = vadd.xlane.f32.xlu0 %v280_v57  ;;  %v1089_v60 = vsub.f32 %v1029_v11, %v251_v58 }
  0xde   : > { %v232_v62 = vpop.xlane.xlu0 %231  ;;  %v234_v63 = vpop.xlane.xlu1 %233 }
  0xdf   : > { %v252_v0 = vmul.f32 0.0078125, %v232_v62  ;;  %v282_v1 = vmul.f32 %v1086_v59, %v1086_v59  ;;  %v253_v2 = vmul.f32 0.0078125, %v234_v63  ;;  %v283_v5 = vmul.f32 %v1089_v60, %v1089_v60 }
  0xe1   : > { %v1096_v3 = vsub.f32 %v1033_v12, %v252_v0  ;;  %306 = vadd.xlane.f32.xlu1 %v281_v61  ;;  %308 = vadd.xlane.f32.xlu0 %v282_v1  ;;  %v1099_v4 = vsub.f32 %v1036_v13, %v253_v2 }
  0xe2   : > { %v236_v6 = vpop.xlane.xlu0 %235  ;;  %v238_v7 = vpop.xlane.xlu1 %237 }
  0xe3   : > { %v254_v8 = vmul.f32 0.0078125, %v236_v6  ;;  %v284_v9 = vmul.f32 %v1096_v3, %v1096_v3  ;;  %v255_v10 = vmul.f32 0.0078125, %v238_v7  ;;  %v285_v13 = vmul.f32 %v1099_v4, %v1099_v4 }
  0xe5   : > { %v1106_v11 = vsub.f32 %v1041_v14, %v254_v8  ;;  %310 = vadd.xlane.f32.xlu1 %v283_v5  ;;  %312 = vadd.xlane.f32.xlu0 %v284_v9  ;;  %v1109_v12 = vsub.f32 %v1044_v15, %v255_v10 }
  0xe7   : > { %v286_v16 = vmul.f32 %v1106_v11, %v1106_v11  ;;  %v287_v17 = vmul.f32 %v1109_v12, %v1109_v12 }
  0xe9   : > { %314 = vadd.xlane.f32.xlu1 %v285_v13  ;;  %316 = vadd.xlane.f32.xlu0 %v286_v16 }
  0xed   : > { %318 = vadd.xlane.f32.xlu1 %v287_v17 }
 0x15a   : > { %v289_v18 = vpop.xlane.xlu0 %288 }
 0x15b   : > { %v321_v14 = vmul.f32 0.007874016, %v289_v18 }
 0x15d   : > { %714 = vrsqrt.f32 %v321_v14  ;;  %vm339_vm0 = vcmp.eq.f32.partialorder %v321_v14, inf  ;;  %vm341_vm1 = vcmp.eq.f32.partialorder %v321_v14, 0.0  ;;  %v342_v38 = vand.u32 2147483648, %v321_v14 }
 0x15e   : > { %v291_v19 = vpop.xlane.xlu1 %290  ;;  %v293_v22 = vpop.xlane.xlu0 %292 }
 0x15f   : > { %v322_v23 = vmul.f32 0.007874016, %v291_v19  ;;  %v323_v15 = vmul.f32 0.007874016, %v293_v22 }
 0x161   : > { %716 = vrsqrt.f32 %v322_v23  ;;  %vm346_vm2 = vcmp.eq.f32.partialorder %v322_v23, inf  ;;  %vm348_vm3 = vcmp.eq.f32.partialorder %v322_v23, 0.0  ;;  %v349_v40 = vand.u32 2147483648, %v322_v23 }
 0x162   : > { %718 = vrsqrt.f32 %v323_v15  ;;  %v295_v24 = vpop.xlane.xlu1 %294  ;;  %v297_v25 = vpop.xlane.xlu0 %296  ;;  %vm353_vm4 = vcmp.eq.f32.partialorder %v323_v15, inf  ;;  %vm355_vm5 = vcmp.eq.f32.partialorder %v323_v15, 0.0  ;;  %v356_v54 = vand.u32 2147483648, %v323_v15 }
 0x163   : > { %v1117_v26 = vmul.f32 0.007874016, %v295_v24  ;;  %v1119_v29 = vmul.f32 0.007874016, %v297_v25 }
 0x165   : > { %720 = vrsqrt.f32 %v1117_v26  ;;  %vm360_vm6 = vcmp.eq.f32.partialorder %v1117_v26, inf  ;;  %vm362_vm7 = vcmp.eq.f32.partialorder %v1117_v26, 0.0  ;;  %v363_v56 = vand.u32 2147483648, %v1117_v26 }
 0x166   : > { %722 = vrsqrt.f32 %v1119_v29  ;;  %v299_v30 = vpop.xlane.xlu1 %298  ;;  %v301_v31 = vpop.xlane.xlu0 %300  ;;  %vm367_vm8 = vcmp.eq.f32.partialorder %v1119_v29, inf  ;;  %vm369_vm9 = vcmp.eq.f32.partialorder %v1119_v29, 0.0  ;;  %v370_v0 = vand.u32 2147483648, %v1119_v29 }
 0x167   : > { %v715_v32 = vpop.eup %714  ;;  %v1123_v33 = vmul.f32 0.007874016, %v299_v30  ;;  %v1125_v34 = vmul.f32 0.007874016, %v301_v31 }
 0x168   : > { %v338_v37 = vmul.f32 %v715_v32, %v321_v14 }
 0x169   : > { %724 = vrsqrt.f32 %v1123_v33  ;;  %vm374_vm10 = vcmp.eq.f32.partialorder %v1123_v33, inf  ;;  %vm376_vm11 = vcmp.eq.f32.partialorder %v1123_v33, 0.0  ;;  %v377_v16 = vand.u32 2147483648, %v1123_v33 }
 0x16a   : > { %v340_v39 = vsel %vm339_vm0, %v321_v14, %v338_v37  ;;  %726 = vrsqrt.f32 %v1125_v34  ;;  %v303_v41 = vpop.xlane.xlu1 %302  ;;  %v305_v42 = vpop.xlane.xlu0 %304  ;;  %vm381_vm12 = vcmp.eq.f32.partialorder %v1125_v34, inf  ;;  %vm383_vm13 = vcmp.eq.f32.partialorder %v1125_v34, 0.0 }
 0x16b   : > { %v717_v45 = vpop.eup %716  ;;  %v343_v46 = vsel %vm341_vm1, %v342_v38, %v340_v39  ;;  %v1129_v47 = vmul.f32 0.007874016, %v303_v41  ;;  %v1131_v48 = vmul.f32 0.007874016, %v305_v42  ;;  %v384_v31 = vand.u32 2147483648, %v1125_v34 }
 0x16c   : > { %v719_v49 = vpop.eup %718  ;;  %v449_v50 = vadd.f32 1e-06, %v343_v46  ;;  %v345_v53 = vmul.f32 %v717_v45, %v322_v23  ;;  %v1184_v41 = vld [vmem:[%s1382_s1] ss:$0 sm:$0xff] }
 0x16d   : > { %v352_v55 = vmul.f32 %v719_v49, %v323_v15  ;;  %728 = vrsqrt.f32 %v1129_v47  ;;  %vm388_vm14 = vcmp.eq.f32.partialorder %v1129_v47, inf  ;;  %vm390_vm15 = vcmp.eq.f32.partialorder %v1129_v47, 0.0 }
 0x16e   : > { %730 = vrcp.f32 %v449_v50  ;;  %v347_v57 = vsel %vm346_vm2, %v322_v23, %v345_v53  ;;  %v307_v58 = vpop.xlane.xlu1 %306  ;;  %v309_v7 = vpop.xlane.xlu0 %308  ;;  %v391_v39 = vand.u32 2147483648, %v1129_v47  ;;  %vm395_vm0 = vcmp.eq.f32.partialorder %v1131_v48, inf }
 0x16f   : > { %v721_v61 = vpop.eup %720  ;;  %v350_v62 = vsel %vm348_vm3, %v349_v40, %v347_v57  ;;  %v354_v63 = vsel %vm353_vm4, %v323_v15, %v352_v55  ;;  %732 = vrsqrt.f32 %v1131_v48  ;;  %v1149_v10 = vmul.f32 0.007874016, %v307_v58 }
 0x170   : > { %v723_v1 = vpop.eup %722  ;;  %v450_v2 = vadd.f32 1e-06, %v350_v62  ;;  %v357_v5 = vsel %vm355_vm5, %v356_v54, %v354_v63  ;;  %v359_v6 = vmul.f32 %v721_v61, %v1117_v26  ;;  %v1161_v19 = vmul.f32 0.007874016, %v309_v7  ;;  %v1195_v54 = vld [vmem:[%s1383_s2] ss:$0 sm:$0xff] }
 0x171   : > { %v451_v8 = vadd.f32 1e-06, %v357_v5  ;;  %v366_v9 = vmul.f32 %v723_v1, %v1119_v29  ;;  %v398_v57 = vand.u32 2147483648, %v1131_v48  ;;  %vm397_vm1 = vcmp.eq.f32.partialorder %v1131_v48, 0.0 }
 0x172   : > { %734 = vrcp.f32 %v450_v2  ;;  %v361_v13 = vsel %vm360_vm6, %v1117_v26, %v359_v6  ;;  %v311_v25 = vpop.xlane.xlu1 %310  ;;  %vm402_vm2 = vcmp.eq.f32.partialorder %v1149_v10, inf  ;;  %vm404_vm3 = vcmp.eq.f32.partialorder %v1149_v10, 0.0 }
 0x173   : > { %v725_v17 = vpop.eup %724  ;;  %736 = vrcp.f32 %v451_v8  ;;  %v364_v18 = vsel %vm362_vm7, %v363_v56, %v361_v13  ;;  %v368_v14 = vsel %vm367_vm8, %v1119_v29, %v366_v9  ;;  %vm409_vm4 = vcmp.eq.f32.partialorder %v1161_v19, inf }
 0x174   : > { %v727_v22 = vpop.eup %726  ;;  %v452_v23 = vadd.f32 1e-06, %v364_v18  ;;  %v371_v15 = vsel %vm369_vm9, %v370_v0, %v368_v14  ;;  %v373_v24 = vmul.f32 %v725_v17, %v1123_v33  ;;  %738 = vrsqrt.f32 %v1149_v10 }
 0x175   : > { %v453_v30 = vadd.f32 1e-06, %v371_v15  ;;  %v380_v26 = vmul.f32 %v727_v22, %v1125_v34  ;;  %v405_v17 = vand.u32 2147483648, %v1149_v10  ;;  %vm411_vm5 = vcmp.eq.f32.partialorder %v1161_v19, 0.0 }
 0x176   : > { %740 = vrcp.f32 %v452_v23  ;;  %v375_v32 = vsel %vm374_vm10, %v1123_v33, %v373_v24  ;;  %v313_v33 = vpop.xlane.xlu0 %312 }
 0x177   : > { %v729_v29 = vpop.eup %728  ;;  %742 = vrcp.f32 %v453_v30  ;;  %v378_v37 = vsel %vm376_vm11, %v377_v16, %v375_v32  ;;  %v382_v38 = vsel %vm381_vm12, %v1125_v34, %v380_v26  ;;  %v1190_v34 = vmul.f32 0.007874016, %v311_v25 }
 0x178   : > { %v731_v40 = vpop.eup %730  ;;  %v454_v42 = vadd.f32 1e-06, %v378_v37  ;;  %v385_v45 = vsel %vm383_vm13, %v384_v31, %v382_v38  ;;  %v387_v46 = vmul.f32 %v729_v29, %v1129_v47  ;;  %744 = vrsqrt.f32 %v1161_v19 }
 0x179   : > { %v733_v49 = vpop.eup %732  ;;  %v466_v50 = vmul.f32 %v731_v40, %v1048_v20  ;;  %v455_v53 = vadd.f32 1e-06, %v385_v45  ;;  %v315_v20 = vpop.xlane.xlu1 %314  ;;  %v1205_v62 = vmul.f32 0.007874016, %v313_v33  ;;  %v412_v37 = vand.u32 2147483648, %v1161_v19 }
 0x17a   : > { %746 = vrcp.f32 %v454_v42  ;;  %v389_v55 = vsel %vm388_vm14, %v1129_v47, %v387_v46  ;;  %v394_v56 = vmul.f32 %v733_v49, %v1131_v48  ;;  %v1212_v8 = vmul.f32 0.007874016, %v315_v20  ;;  %v317_v15 = vpop.xlane.xlu0 %316 }
 0x17b   : > { %v504_v58 = vmul.f32 %v1184_v41, %v466_v50  ;;  %748 = vrcp.f32 %v455_v53  ;;  %v392_v61 = vsel %vm390_vm15, %v391_v39, %v389_v55  ;;  %vm416_vm6 = vcmp.eq.f32.partialorder %v1190_v34, inf }
 0x17c   : > { %v735_v63 = vpop.eup %734  ;;  %v456_v0 = vadd.f32 1e-06, %v392_v61  ;;  %v396_v1 = vsel %vm395_vm0, %v1131_v48, %v394_v56  ;;  %750 = vrsqrt.f32 %v1190_v34  ;;  %vm418_vm7 = vcmp.eq.f32.partialorder %v1190_v34, 0.0 }
 0x17d   : > { %v737_v2 = vpop.eup %736  ;;  %v527_v5 = vadd.f32 %v1195_v54, %v504_v58  ;;  %v468_v6 = vmul.f32 %v735_v63, %v1054_v27  ;;  %v399_v7 = vsel %vm397_vm1, %v398_v57, %v396_v1  ;;  %v319_v24 = vpop.xlane.xlu1 %318  ;;  %vm423_vm8 = vcmp.eq.f32.partialorder %v1205_v62, inf }
 0x17e   : > { %v739_v47 = vpop.eup %738  ;;  %v470_v9 = vmul.f32 %v737_v2, %v1050_v21  ;;  %752 = vrcp.f32 %v456_v0  ;;  %v457_v13 = vadd.f32 1e-06, %v399_v7  ;;  %vm425_vm9 = vcmp.eq.f32.partialorder %v1205_v62, 0.0 }
 0x17f   : > { %543 = vst [vmem:[%s1218_s8] sm:$0xff] %v527_v5  ;;  %v505_v48 = vmul.f32 %v1184_v41, %v468_v6  ;;  %v401_v16 = vmul.f32 %v739_v47, %v1149_v10  ;;  %754 = vrsqrt.f32 %v1205_v62  ;;  %vm430_vm10 = vcmp.eq.f32.partialorder %v1212_v8, inf }
 0x180   : > { %v741_v27 = vpop.eup %740  ;;  %v506_v21 = vmul.f32 %v1184_v41, %v470_v9  ;;  %756 = vrcp.f32 %v457_v13  ;;  %v426_v9 = vand.u32 2147483648, %v1205_v62  ;;  %vm432_vm11 = vcmp.eq.f32.partialorder %v1212_v8, 0.0 }
 0x181   : > { %v743_v18 = vpop.eup %742  ;;  %v528_v14 = vadd.f32 %v1195_v54, %v505_v48  ;;  %v472_v22 = vmul.f32 %v741_v27, %v1056_v28  ;;  %v403_v23 = vsel %vm402_vm2, %v1149_v10, %v401_v16  ;;  %758 = vrsqrt.f32 %v1212_v8 }
 0x182   : > { %v745_v25 = vpop.eup %744  ;;  %v529_v30 = vadd.f32 %v1195_v54, %v506_v21  ;;  %v474_v26 = vmul.f32 %v743_v18, %v1062_v35  ;;  %v406_v31 = vsel %vm404_vm3, %v405_v17, %v403_v23  ;;  %v1244_v35 = vmul.f32 0.007874016, %v317_v15 }
 0x183   : > { %544 = vst [vmem:[%s1218_s8 + $0x8] sm:$0xff] %v528_v14  ;;  %v507_v28 = vmul.f32 %v1184_v41, %v472_v22  ;;  %v458_v32 = vadd.f32 1e-06, %v406_v31  ;;  %v408_v29 = vmul.f32 %v745_v25, %v1161_v19  ;;  %v1246_v10 = vmul.f32 0.007874016, %v319_v24 }
 0x184   : > { %v747_v38 = vpop.eup %746  ;;  %545 = vst [vmem:[%s1218_s8 + $0x10] sm:$0xff] %v529_v30  ;;  %v508_v39 = vmul.f32 %v1184_v41, %v474_v26  ;;  %v433_v48 = vand.u32 2147483648, %v1212_v8  ;;  %vm437_vm12 = vcmp.eq.f32.partialorder %v1244_v35, inf  ;;  %vm439_vm13 = vcmp.eq.f32.partialorder %v1244_v35, 0.0 }
 0x185   : > { %v749_v40 = vpop.eup %748  ;;  %v530_v42 = vadd.f32 %v1195_v54, %v507_v28  ;;  %v476_v45 = vmul.f32 %v747_v38, %v1064_v36  ;;  %760 = vrcp.f32 %v458_v32  ;;  %v410_v46 = vsel %vm409_vm4, %v1161_v19, %v408_v29 }
 0x186   : > { %v751_v33 = vpop.eup %750  ;;  %v531_v49 = vadd.f32 %v1195_v54, %v508_v39  ;;  %v478_v50 = vmul.f32 %v749_v40, %v1070_v43  ;;  %v413_v53 = vsel %vm411_vm5, %v412_v37, %v410_v46  ;;  %762 = vrsqrt.f32 %v1244_v35 }
 0x187   : > { %546 = vst [vmem:[%s1218_s8 + $0x18] sm:$0xff] %v530_v42  ;;  %v509_v55 = vmul.f32 %v1184_v41, %v476_v45  ;;  %v459_v56 = vadd.f32 1e-06, %v413_v53  ;;  %v415_v36 = vmul.f32 %v751_v33, %v1190_v34  ;;  %v419_v43 = vand.u32 2147483648, %v1190_v34 }
 0x188   : > { %v753_v57 = vpop.eup %752  ;;  %547 = vst [vmem:[%s1218_s8 + $0x20] sm:$0xff] %v531_v49  ;;  %v510_v20 = vmul.f32 %v1184_v41, %v478_v50  ;;  %764 = vrsqrt.f32 %v1246_v10  ;;  %vm444_vm14 = vcmp.eq.f32.partialorder %v1246_v10, inf  ;;  %v447_v37 = vand.u32 2147483648, %v1246_v10 }
 0x189   : > { %v755_v19 = vpop.eup %754  ;;  %v532_v58 = vadd.f32 %v1195_v54, %v509_v55  ;;  %v480_v61 = vmul.f32 %v753_v57, %v1072_v44  ;;  %766 = vrcp.f32 %v459_v56  ;;  %v417_v63 = vsel %vm416_vm6, %v1190_v34, %v415_v36 }
 0x18a   : > { %v757_v0 = vpop.eup %756  ;;  %v533_v1 = vadd.f32 %v1195_v54, %v510_v20  ;;  %v420_v2 = vsel %vm418_vm7, %v419_v43, %v417_v63  ;;  %v422_v5 = vmul.f32 %v755_v19, %v1205_v62  ;;  %vm446_vm15 = vcmp.eq.f32.partialorder %v1246_v10, 0.0 }
 0x18b   : > { %v759_v6 = vpop.eup %758  ;;  %548 = vst [vmem:[%s1218_s8 + $0x28] sm:$0xff] %v532_v58  ;;  %v511_v7 = vmul.f32 %v1184_v41, %v480_v61  ;;  %v482_v47 = vmul.f32 %v757_v0, %v1078_v51  ;;  %v460_v44 = vadd.f32 1e-06, %v420_v2 }
 0x18c   : > { %549 = vst [vmem:[%s1218_s8 + $0x30] sm:$0xff] %v533_v1  ;;  %v424_v34 = vsel %vm423_vm8, %v1205_v62, %v422_v5  ;;  %v429_v13 = vmul.f32 %v759_v6, %v1212_v8 }
 0x18d   : > { %v534_v16 = vadd.f32 %v1195_v54, %v511_v7  ;;  %v512_v51 = vmul.f32 %v1184_v41, %v482_v47  ;;  %768 = vrcp.f32 %v460_v44  ;;  %v427_v27 = vsel %vm425_vm9, %v426_v9, %v424_v34 }
 0x18e   : > { %v461_v21 = vadd.f32 1e-06, %v427_v27  ;;  %v431_v17 = vsel %vm430_vm10, %v1212_v8, %v429_v13  ;;  %v440_v8 = vand.u32 2147483648, %v1244_v35 }
 0x18f   : > { %v761_v18 = vpop.eup %760  ;;  %550 = vst [vmem:[%s1218_s8 + $0x38] sm:$0xff] %v534_v16  ;;  %v535_v62 = vadd.f32 %v1195_v54, %v512_v51  ;;  %v434_v14 = vsel %vm432_vm11, %v433_v48, %v431_v17 }
 0x190   : > { %v763_v22 = vpop.eup %762  ;;  %v484_v23 = vmul.f32 %v761_v18, %v1080_v52  ;;  %770 = vrcp.f32 %v461_v21  ;;  %v462_v15 = vadd.f32 1e-06, %v434_v14 }
 0x191   : > { %551 = vst [vmem:[%s1218_s8 + $0x40] sm:$0xff] %v535_v62  ;;  %v436_v24 = vmul.f32 %v763_v22, %v1244_v35 }
 0x192   : > { %v765_v25 = vpop.eup %764  ;;  %v513_v30 = vmul.f32 %v1184_v41, %v484_v23  ;;  %772 = vrcp.f32 %v462_v15 }
 0x193   : > { %v767_v26 = vpop.eup %766  ;;  %v438_v31 = vsel %vm437_vm12, %v1244_v35, %v436_v24  ;;  %v443_v52 = vmul.f32 %v765_v25, %v1246_v10 }
 0x194   : > { %v536_v28 = vadd.f32 %v1195_v54, %v513_v30  ;;  %v486_v32 = vmul.f32 %v767_v26, %v1086_v59  ;;  %v441_v29 = vsel %vm439_vm13, %v440_v8, %v438_v31 }
 0x195   : > { %v463_v38 = vadd.f32 1e-06, %v441_v29  ;;  %v445_v39 = vsel %vm444_vm14, %v1246_v10, %v443_v52 }
 0x196   : > { %552 = vst [vmem:[%s1218_s8 + $0x48] sm:$0xff] %v536_v28  ;;  %v514_v35 = vmul.f32 %v1184_v41, %v486_v32  ;;  %v448_v40 = vsel %vm446_vm15, %v447_v37, %v445_v39 }
 0x197   : > { %v769_v42 = vpop.eup %768  ;;  %774 = vrcp.f32 %v463_v38  ;;  %v464_v45 = vadd.f32 1e-06, %v448_v40 }
 0x198   : > { %v537_v59 = vadd.f32 %v1195_v54, %v514_v35  ;;  %v488_v46 = vmul.f32 %v769_v42, %v1089_v60 }
 0x199   : > { %776 = vrcp.f32 %v464_v45 }
 0x19a   : > { %v771_v33 = vpop.eup %770  ;;  %553 = vst [vmem:[%s1218_s8 + $0x50] sm:$0xff] %v537_v59  ;;  %v515_v49 = vmul.f32 %v1184_v41, %v488_v46 }
 0x19b   : > { %v490_v10 = vmul.f32 %v771_v33, %v1096_v3 }
 0x19c   : > { %v773_v50 = vpop.eup %772  ;;  %v538_v53 = vadd.f32 %v1195_v54, %v515_v49 }
 0x19d   : > { %v516_v55 = vmul.f32 %v1184_v41, %v490_v10  ;;  %v492_v56 = vmul.f32 %v773_v50, %v1099_v4 }
 0x19e   : > { %554 = vst [vmem:[%s1218_s8 + $0x58] sm:$0xff] %v538_v53 }
 0x19f   : > { %v539_v60 = vadd.f32 %v1195_v54, %v516_v55  ;;  %v517_v36 = vmul.f32 %v1184_v41, %v492_v56 }
 0x1a1   : > { %v775_v57 = vpop.eup %774  ;;  %555 = vst [vmem:[%s1218_s8 + $0x60] sm:$0xff] %v539_v60  ;;  %v540_v3 = vadd.f32 %v1195_v54, %v517_v36 }
 0x1a2   : > { %v494_v20 = vmul.f32 %v775_v57, %v1106_v11 }
 0x1a3   : > { %v777_v43 = vpop.eup %776  ;;  %556 = vst [vmem:[%s1218_s8 + $0x68] sm:$0xff] %v540_v3 }
 0x1a4   : > { %v518_v19 = vmul.f32 %v1184_v41, %v494_v20  ;;  %v496_v4 = vmul.f32 %v777_v43, %v1109_v12 }
 0x1a6   : > { %v541_v58 = vadd.f32 %v1195_v54, %v518_v19  ;;  %v519_v61 = vmul.f32 %v1184_v41, %v496_v4 }
 0x1a8   : > { %557 = vst [vmem:[%s1218_s8 + $0x70] sm:$0xff] %v541_v58  ;;  %v542_v11 = vadd.f32 %v1195_v54, %v519_v61 }
 0x1aa   : > { %558 = vst [vmem:[%s1218_s8 + $0x78] sm:$0xff] %v542_v11 }
 0x1ab   : > { %821 = shalt.err (!%p818_p1)
}
 0x1ac   : > { %s822_s9 = scalar_lea.hbm %s1333_s26, 2048  ;;  %s826_s23 = scalar_lea.hbm %s1384_s3, 8192 }
 0x1ad   : > { %p823_p3 = scmp.ne.s32.totalorder %s1333_s26, %s822_s9  ;;  %p827_p0 = scmp.lt.u32.totalorder %s1333_s26, %s1384_s3 }
 0x1ae   : > { %p828_p2 = scmp.lt.u32.totalorder %s826_s23, %s822_s9  ;;  %p830_p6 = scmp.lt.u32.totalorder %s822_s9, %s1333_s26 }
 0x1af   : > { %p824_p4 = pnand %p823_p3, %p1391_p10 }
 0x1b0   : > { %p829_p7 = por %p828_p2, %p827_p0 }
 0x1b1   : > { %p825_p5 = pneg %p824_p4 }
 0x1b2   : > { %p831_p11 = por %p830_p6, %p829_p7 }
 0x1b4   : > { %p832_p12 = pnand %p831_p11, %p825_p5 }
 0x1b6   : > { %835 = shalt.err (!%p832_p12)
}
 0x1b7   : > { %s880_s7 = smov 128   ;;  %s881_s8 = smov 8  }
 0x1b8   : > { %666 = dma.vmem_to_hbm [thread:$0]  (%p1391_p10), %s1335_s19, 2048, %s1333_s26, %s560_s16, %s880_s7, %s880_s7, %s881_s8  }
 0x1b9 PF: > { %p677_p8 = scmp.ge.s32.totalorder %s874_s15, 2  ;;  %s588_s17 = sand.u32 1, %s862_s12  }
 0x1ba   : > { %p1392_p9 = scmp.ne.s32.totalorder %s1389_s25, 0  ;;  %s589_s20 = scalar_lea.sflag [#allocation4], %s588_s17 }
 0x1bc   : > { %p673_p13 = pnand %p677_p8, %p1392_p9 }
 0x1be   : > { %857 = dma.done.wait (!%p673_p13), %s589_s20, 2048  }
 0x1bf   : > { %859 = vsyncadd (!%p673_p13), %s589_s20, 4294965248  ;;  %p16_p1 = scmp.ge.s32.totalorder %s927_s18, 6   ;;  %s1393_s12 = smov %s866_s13 }
 0x1c0   : > { %s1394_s13 = smov %s870_s14  ;;  %s1395_s14 = smov %s939_s21 }
 0x1c1   : > { %s1396_s15 = smov %s927_s18  ;;  %18 = sbr.rel (!%p16_p1) target bundleno = 5 (0x5), region = 77 }
 0x1c8   :  { %594 = vsyncpa [#allocation3], 1 }
 0x1c9   :  { %596 = vsyncpa [#allocation3 + $0x1], 1 }
 0x1ca   :  { %597 = vsyncpa [#allocation4], 1 }
 0x1cb   :  { %599 = vsyncpa [#allocation4 + $0x1], 1 }

</bundles_post_ra>
